<compile_context>
chip_gen: v7x
topology: tpu7x:2x2x1
jax: 0.10.0
libtpu: 0.0.40
codegen_flags: <defaults>
</compile_context>

<pallas_src>
import functools
import math

import jax
import jax.numpy as jnp
from jax.experimental import pallas as pl
from jax.experimental.pallas import tpu as pltpu


_MEGACORE_SPLIT_BYTES = 2 * 1024 * 1024  # split single-block launches above this


def _round_down(x, m):
    return (x // m) * m


def _round_up(x, m):
    return ((x + m - 1) // m) * m


def _sublane_for(dtype):
    # Native sublane tile: 8 for 4-byte, 16 for 2-byte, 32 for 1-byte dtypes.
    itemsize = jnp.dtype(dtype).itemsize
    return max(8, 32 // max(itemsize, 1))


@functools.lru_cache(maxsize=None)
def _vmem_capacity_bytes():
    try:
        cap = int(pltpu.get_tpu_info().vmem_capacity_bytes)
        if cap > 0:
            return cap
    except Exception:
        pass
    # Conservative fallback sized for the smallest generation (v7x: 64 MiB/TC).
    return 64 * 1024 * 1024


def _default_vmem_limit(capacity):
    # ~3/4 of physical VMEM: 96 MiB on v5e/v6e (128 MiB), 48 MiB on v7x (64 MiB).
    return (capacity * 3) // 4


def _block_footprint_bytes(block_elems, itemsize):
    # in + out blocks, each double-buffered (4 * itemsize per element), plus
    # ~2 live f32 temporaries per element inside the kernel body.
    return block_elems * (4 * itemsize + 8)


def _block_elems_budget(itemsize, vmem_limit):
    # Live-footprint budget at ~85% of the scoped limit; never below one vreg.
    per_elem = 4 * itemsize + 8
    return max((vmem_limit * 85 // 100) // per_elem, 8 * 128)


# ----------------------------- channels_first ------------------------------ #
def _ln_cf_kernel(x_ref, w_ref, b_ref, o_ref, *, eps):
    # x_ref/o_ref: (bb, C, tt)   w_ref/b_ref: (C, 1) float32
    x = x_ref[...].astype(jnp.float32)                       # (bb, C, tt)
    u = jnp.mean(x, axis=1, keepdims=True)                   # (bb, 1, tt)
    d = x - u
    var = jnp.mean(d * d, axis=1, keepdims=True)             # (bb, 1, tt)
    y = d * jax.lax.rsqrt(var + eps)                         # EUP rsqrt
    o_ref[...] = (w_ref[...][None] * y + b_ref[...][None]).astype(o_ref.dtype)


def layernorm_channels_first(x, weight, bias, eps=1e-6, *, t_block=None, b_block=None):
    """x: (B, C, T); weight, bias: (C,). Normalizes over C per (b, t)."""
    B, C, T = x.shape
    w2 = weight.astype(jnp.float32).reshape(C, 1)
    b2 = bias.astype(jnp.float32).reshape(C, 1)

    itemsize = jnp.dtype(x.dtype).itemsize
    capacity = _vmem_capacity_bytes()
    cap_hi = capacity * 9 // 10
    vmem_limit = _default_vmem_limit(capacity)
    budget_elems = _block_elems_budget(itemsize, vmem_limit)

    if t_block is not None or b_block is not None:
        tt = T if t_block is None else max(1, min(int(t_block), T))
        if tt < T:
            tt = min(max(_round_down(tt, 128), 128), T)
        bb = 1 if b_block is None else max(1, min(int(b_block), B))
    else:
        if T < 128 or C * T <= budget_elems:
            # Whole T fits (or T is too small to be lane-dense): block the
            # full time axis and pack multiple batch rows per block instead.
            tt = T
            bb = max(1, min(B, budget_elems // max(C * T, 1)))
        else:
            bb = 1
            tt = min(T, max(_round_down(budget_elems // C, 128), 128))
            # Keep >= 512 lanes when T and physical VMEM allow (long DMA
            # segments, unmasked vst).
            tt_pref = min(T, 512)
            if tt < tt_pref and _block_footprint_bytes(C * tt_pref, itemsize) <= cap_hi:
                tt = tt_pref

    # Megacore: guarantee >= 2 grid steps on a "parallel" axis for large inputs.
    grid_b = pl.cdiv(B, bb)
    grid_t = pl.cdiv(T, tt)
    if grid_b * grid_t == 1 and B * C * T * itemsize >= _MEGACORE_SPLIT_BYTES:
        if B >= 2:
            bb = pl.cdiv(B, 2)
        elif T >= 256:
            tt = min(_round_up(pl.cdiv(T, 2), 128), T)
        grid_b = pl.cdiv(B, bb)
        grid_t = pl.cdiv(T, tt)

    # Per-call VMEM limit derived from the actual block footprint (large-C guard).
    footprint = _block_footprint_bytes(bb * C * tt, itemsize) + 4 * C * 4
    vmem_limit = min(max(vmem_limit, footprint + (1 << 20)), cap_hi)
    # TODO(synk): tile C with a two-pass accumulator scheme if a single
    # (*, C, 128) block still cannot fit under ~90% of physical VMEM.

    kernel = functools.partial(_ln_cf_kernel, eps=eps)
    return pl.pallas_call(
        kernel,
        out_shape=jax.ShapeDtypeStruct((B, C, T), x.dtype),
        grid_spec=pltpu.PrefetchScalarGridSpec(
            num_scalar_prefetch=0,
            grid=(grid_b, grid_t),
            in_specs=[
                pl.BlockSpec((bb, C, tt), lambda b, t: (b, 0, t)),
                pl.BlockSpec((C, 1), lambda b, t: (0, 0)),
                pl.BlockSpec((C, 1), lambda b, t: (0, 0)),
            ],
            out_specs=pl.BlockSpec((bb, C, tt), lambda b, t: (b, 0, t)),
        ),
        compiler_params=pltpu.CompilerParams(
            dimension_semantics=("parallel", "parallel"),
            vmem_limit_bytes=int(vmem_limit),
        ),
    )(x, w2, b2)


# ----------------------------- channels_last ------------------------------- #
def _ln_cl_kernel(x_ref, w_ref, b_ref, o_ref, *, eps):
    # x_ref/o_ref: (tm, C)   w_ref/b_ref: (1, C) float32
    x = x_ref[...].astype(jnp.float32)                       # (tm, C)
    u = jnp.mean(x, axis=-1, keepdims=True)                  # (tm, 1)
    d = x - u
    var = jnp.mean(d * d, axis=-1, keepdims=True)            # (tm, 1)
    y = d * jax.lax.rsqrt(var + eps)
    o_ref[...] = (w_ref[...] * y + b_ref[...]).astype(o_ref.dtype)


def layernorm_channels_last(x, weight, bias, eps=1e-6, *, row_block=None):
    """x: (..., C); weight, bias: (C,). Normalizes the last axis."""
    orig_shape = x.shape
    C = orig_shape[-1]
    M = int(math.prod(orig_shape[:-1])) if len(orig_shape) > 1 else 1
    x2 = x.reshape(M, C)
    w2 = weight.astype(jnp.float32).reshape(1, C)
    b2 = bias.astype(jnp.float32).reshape(1, C)

    itemsize = jnp.dtype(x.dtype).itemsize
    sub = _sublane_for(x.dtype)
    capacity = _vmem_capacity_bytes()
    cap_hi = capacity * 9 // 10
    vmem_limit = _default_vmem_limit(capacity)
    budget_elems = _block_elems_budget(itemsize, vmem_limit)

    if row_block is not None:
        tm = max(1, min(int(row_block), M))
        if tm < M:
            tm = min(max(_round_down(tm, sub), sub), M)
    else:
        tm = min(M, budget_elems // max(C, 1))
        if tm < M:
            tm = max(_round_down(tm, sub), sub)   # dtype-native sublane tile

    # Megacore: split a single-block launch on large inputs across >= 2 steps.
    if tm >= M and M * C * itemsize >= _MEGACORE_SPLIT_BYTES and M >= 2 * sub:
        tm = _round_up(pl.cdiv(M, 2), sub)
    grid_m = pl.cdiv(M, tm)

    footprint = _block_footprint_bytes(tm * C, itemsize) + 4 * C * 4
    vmem_limit = min(max(vmem_limit, footprint + (1 << 20)), cap_hi)

    kernel = functools.partial(_ln_cl_kernel, eps=eps)
    out = pl.pallas_call(
        kernel,
        out_shape=jax.ShapeDtypeStruct((M, C), x.dtype),
        grid_spec=pltpu.PrefetchScalarGridSpec(
            num_scalar_prefetch=0,
            grid=(grid_m,),
            in_specs=[
                pl.BlockSpec((tm, C), lambda i: (i, 0)),
                pl.BlockSpec((1, C), lambda i: (0, 0)),
                pl.BlockSpec((1, C), lambda i: (0, 0)),
            ],
            out_specs=pl.BlockSpec((tm, C), lambda i: (i, 0)),
        ),
        compiler_params=pltpu.CompilerParams(
            dimension_semantics=("parallel",),
            vmem_limit_bytes=int(vmem_limit),
        ),
    )(x2, w2, b2)
    return out.reshape(orig_shape)


# -------------------------------- module ----------------------------------- #
class LayerNormPallas:
    def __init__(self, normalized_shape, eps=1e-6, data_format="channels_first"):
        if data_format not in ["channels_last", "channels_first"]:
            raise NotImplementedError
        self.eps = eps
        self.data_format = data_format
        self.weight = jnp.ones((normalized_shape,), jnp.float32)
        self.bias = jnp.zeros((normalized_shape,), jnp.float32)

    def __call__(self, x):
        if self.data_format == "channels_last":
            return layernorm_channels_last(x, self.weight, self.bias, self.eps)
        return layernorm_channels_first(x, self.weight, self.bias, self.eps)


# ------------------------------ reference ----------------------------------- #
def _ref_channels_first(x, w, b, eps):
    u = x.mean(axis=1, keepdims=True)
    s = ((x - u) ** 2).mean(axis=1, keepdims=True)
    y = (x - u) / jnp.sqrt(s + eps)
    return w[None, :, None] * y + b[None, :, None]


if __name__ == "__main__":
    key = jax.random.PRNGKey(0)
    kx, kw, kb = jax.random.split(key, 3)

    # ---- small channels_first (single block, small-T batch-packing path) ----
    B, C, T = 2, 32, 16
    x = jax.random.normal(kx, (B, C, T), jnp.float32)

    ln = LayerNormPallas(C, eps=1e-6, data_format="channels_first")
    ln.weight = 1.0 + 0.1 * jax.random.normal(kw, (C,), jnp.float32)
    ln.bias = 0.1 * jax.random.normal(kb, (C,), jnp.float32)

    out = jax.block_until_ready(ln(x))
    ref = _ref_channels_first(x, ln.weight, ln.bias, ln.eps)
    assert out.shape == (B, C, T)
    assert jnp.allclose(out, ref, atol=1e-5, rtol=1e-5), "channels_first mismatch"

    # ---- small channels_last ----
    x_cl = jnp.transpose(x, (0, 2, 1))  # (B, T, C)
    ln_cl = LayerNormPallas(C, eps=1e-6, data_format="channels_last")
    ln_cl.weight, ln_cl.bias = ln.weight, ln.bias
    out_cl = jax.block_until_ready(ln_cl(x_cl))
    ref_cl = jnp.transpose(ref, (0, 2, 1))
    assert jnp.allclose(out_cl, ref_cl, atol=1e-5, rtol=1e-5), "channels_last mismatch"

    # ---- multi-block paths (partial tail blocks on both axes) ----
    B2, C2, T2 = 3, 64, 640            # T2 not a multiple of 256 -> partial T block
    x_big = jax.random.normal(kx, (B2, C2, T2), jnp.float32)
    w_big = 1.0 + 0.1 * jax.random.normal(kw, (C2,), jnp.float32)
    b_big = 0.1 * jax.random.normal(kb, (C2,), jnp.float32)
    ref_big = _ref_channels_first(x_big, w_big, b_big, 1e-6)

    out_big = jax.block_until_ready(
        layernorm_channels_first(x_big, w_big, b_big, 1e-6, t_block=256)
    )
    assert jnp.allclose(out_big, ref_big, atol=1e-5, rtol=1e-5), "tiled-T CF mismatch"

    out_bb = jax.block_until_ready(
        layernorm_channels_first(x_big, w_big, b_big, 1e-6, b_block=2)  # grid_b=2, tail bb=1
    )
    assert jnp.allclose(out_bb, ref_big, atol=1e-5, rtol=1e-5), "batch-packed CF mismatch"

    x_big_cl = jnp.transpose(x_big, (0, 2, 1))               # (B2, T2, C2), M=1920
    out_big_cl = jax.block_until_ready(
        layernorm_channels_last(x_big_cl, w_big, b_big, 1e-6, row_block=512)
    )
    ref_big_cl = jnp.transpose(ref_big, (0, 2, 1))
    assert jnp.allclose(out_big_cl, ref_big_cl, atol=1e-5, rtol=1e-5), "tiled CL mismatch"

    print("KERNEL_OK")
</pallas_src>

<mosaic_0001>
module attributes {stable_mosaic.version = 11 : i64} {
  func.func @_ln_cf_kernel(%arg0: i32, %arg1: i32, %arg2: memref<2x32x16xf32, #tpu.memory_space<vmem>>, %arg3: memref<32x1xf32, #tpu.memory_space<vmem>>, %arg4: memref<32x1xf32, #tpu.memory_space<vmem>>, %arg5: memref<2x32x16xf32, #tpu.memory_space<vmem>>) attributes {dimension_semantics = [#tpu.dimension_semantics<parallel>, #tpu.dimension_semantics<parallel>], iteration_bounds = array<i64: 1, 1>, scalar_prefetch = 0 : i64, scratch_operands = 0 : i64, tpu.core_type = #tpu.core_type<tc>, window_params = [{transform_indices = @transform_0, window_bounds = array<i64: 2, 32, 16>}, {pipeline_mode = #tpu.pipeline_mode<synchronous>, transform_indices = @transform_1, window_bounds = array<i64: 32, 1>}, {pipeline_mode = #tpu.pipeline_mode<synchronous>, transform_indices = @transform_2, window_bounds = array<i64: 32, 1>}, {transform_indices = @transform_3, window_bounds = array<i64: 2, 32, 16>}]} {
    %c0 = arith.constant 0 : index
    %c0_0 = arith.constant 0 : index
    %c0_1 = arith.constant 0 : index
    %0 = vector.load %arg2[%c0, %c0_0, %c0_1] : memref<2x32x16xf32, #tpu.memory_space<vmem>>, vector<2x32x16xf32>
    %cst = arith.constant dense<0.000000e+00> : vector<2x16xf32>
    %1 = vector.multi_reduction <add>, %0, %cst [1] : vector<2x32x16xf32> to vector<2x16xf32>
    %2 = vector.shape_cast %1 : vector<2x16xf32> to vector<2x1x16xf32>
    %cst_2 = arith.constant 3.200000e+01 : f32
    %3 = vector.broadcast %cst_2 : f32 to vector<2x1x16xf32>
    %4 = arith.divf %2, %3 : vector<2x1x16xf32>
    %5 = vector.broadcast %4 : vector<2x1x16xf32> to vector<2x32x16xf32>
    %6 = arith.subf %0, %5 : vector<2x32x16xf32>
    %7 = arith.mulf %6, %6 : vector<2x32x16xf32>
    %cst_3 = arith.constant dense<0.000000e+00> : vector<2x16xf32>
    %8 = vector.multi_reduction <add>, %7, %cst_3 [1] : vector<2x32x16xf32> to vector<2x16xf32>
    %9 = vector.shape_cast %8 : vector<2x16xf32> to vector<2x1x16xf32>
    %cst_4 = arith.constant 3.200000e+01 : f32
    %10 = vector.broadcast %cst_4 : f32 to vector<2x1x16xf32>
    %11 = arith.divf %9, %10 : vector<2x1x16xf32>
    %cst_5 = arith.constant 9.99999997E-7 : f32
    %12 = vector.broadcast %cst_5 : f32 to vector<2x1x16xf32>
    %13 = arith.addf %11, %12 : vector<2x1x16xf32>
    %14 = math.rsqrt %13 : vector<2x1x16xf32>
    %15 = vector.broadcast %14 : vector<2x1x16xf32> to vector<2x32x16xf32>
    %16 = arith.mulf %6, %15 : vector<2x32x16xf32>
    %c0_6 = arith.constant 0 : index
    %c0_7 = arith.constant 0 : index
    %17 = vector.load %arg3[%c0_6, %c0_7] : memref<32x1xf32, #tpu.memory_space<vmem>>, vector<32x1xf32>
    %18 = vector.shape_cast %17 : vector<32x1xf32> to vector<1x32x1xf32>
    %19 = vector.broadcast %18 : vector<1x32x1xf32> to vector<2x32x16xf32>
    %20 = arith.mulf %19, %16 : vector<2x32x16xf32>
    %c0_8 = arith.constant 0 : index
    %c0_9 = arith.constant 0 : index
    %21 = vector.load %arg4[%c0_8, %c0_9] : memref<32x1xf32, #tpu.memory_space<vmem>>, vector<32x1xf32>
    %22 = vector.shape_cast %21 : vector<32x1xf32> to vector<1x32x1xf32>
    %23 = vector.broadcast %22 : vector<1x32x1xf32> to vector<2x32x16xf32>
    %24 = arith.addf %20, %23 : vector<2x32x16xf32>
    %c0_10 = arith.constant 0 : index
    %c0_11 = arith.constant 0 : index
    %c0_12 = arith.constant 0 : index
    %25 = vector.load %arg5[%c0_10, %c0_11, %c0_12] : memref<2x32x16xf32, #tpu.memory_space<vmem>>, vector<2x32x16xf32>
    tpu.vector_store %arg5[%c0_10, %c0_11, %c0_12], %24 {strides = array<i32>} : memref<2x32x16xf32, #tpu.memory_space<vmem>>, vector<2x32x16xf32>,
    return
  }
  func.func @transform_0(%arg0: i32, %arg1: i32) -> (i32, i32, i32) {
    %c0_i32 = arith.constant 0 : i32
    %c0_i32_0 = arith.constant 0 : i32
    return %arg0, %c0_i32, %arg1 : i32, i32, i32
  }
  func.func @transform_1(%arg0: i32, %arg1: i32) -> (i32, i32) {
    %c0_i32 = arith.constant 0 : i32
    %c0_i32_0 = arith.constant 0 : i32
    %c0_i32_1 = arith.constant 0 : i32
    return %c0_i32, %c0_i32_0 : i32, i32
  }
  func.func @transform_2(%arg0: i32, %arg1: i32) -> (i32, i32) {
    %c0_i32 = arith.constant 0 : i32
    %c0_i32_0 = arith.constant 0 : i32
    %c0_i32_1 = arith.constant 0 : i32
    return %c0_i32, %c0_i32_0 : i32, i32
  }
  func.func @transform_3(%arg0: i32, %arg1: i32) -> (i32, i32, i32) {
    %c0_i32 = arith.constant 0 : i32
    %c0_i32_0 = arith.constant 0 : i32
    return %arg0, %c0_i32, %arg1 : i32, i32, i32
  }
}

</mosaic_0001>

<bundles_post_ra>
// kernel: tpu_custom_call.1
= control target key start
LH: loop header
LB: loop body
LE: loop exit
PB: predicated region body
PF: predicated region fallthrough
CT: control target
= control target key end

     0   :  { %v191_v0 = vmov 0   ;;  %vm22_vm0 = vcmask 130048   ;;  %s308_s1 = inlined_call_operand.vmem [shape: f32[32,1], index: 1, kind: input, shape index: {}]   ;;  %s309_s2 = inlined_call_operand.vmem [shape: f32[32,1], index: 2, kind: input, shape index: {}]   ;;  %s310_s0 = inlined_call_operand.vmem [shape: f32[2,32,16], index: 0, kind: input, shape index: {}]   ;;  %s311_s3 = inlined_call_operand.vmem [shape: f32[2,32,16], index: 3, kind: output, shape index: {}]  }
   0x1   :  { %186 = vset.pattern.permute.xlu1 %v191_v0  ;;  %185 = vset.pattern.permute.xlu0 %v191_v0  ;;  %v110_v1 = vld [vmem:[%s308_s1 + $0x10] sm:$0xff]  ;;  %v108_v2 = vld [vmem:[%s308_s1] sm:$0xff]  ;;  %v111_v3 = vld [vmem:[%s308_s1 + $0x18] sm:$0xff] }
   0x2   :  { %124 = vperm.xlu1 %186, %v110_v1   ;;  %114 = vperm.xlu0 %185, %v108_v2   ;;  %v109_v4 = vld [vmem:[%s308_s1 + $0x8] sm:$0xff]  ;;  %v140_v6 = vld [vmem:[%s309_s2] sm:$0xff]  ;;  %v143_v7 = vld [vmem:[%s309_s2 + $0x18] sm:$0xff] }
   0x3   :  { %v141_v5 = vld [vmem:[%s309_s2 + $0x8] sm:$0xff]  ;;  %v142_v8 = vld [vmem:[%s309_s2 + $0x10] sm:$0xff]  ;;  %v14_v9 = vld [vmem:[%s310_s0] sm:$0xff] }
   0x4   :  { %v15_v10 = vld [vmem:[%s310_s0 + $0x8] sm:$0xff]  ;;  %v18_v11 = vld [vmem:[%s310_s0 + $0x20] sm:$0xff]  ;;  %v23_v13 = vsel %vm22_vm0, %v14_v9, 0.0  ;;  %v16_v15 = vld [vmem:[%s310_s0 + $0x10] sm:$0xff] }
   0x5   :  { %v19_v12 = vld [vmem:[%s310_s0 + $0x28] sm:$0xff]  ;;  %v24_v14 = vsel %vm22_vm0, %v15_v10, 0.0  ;;  %v36_v16 = vsel %vm22_vm0, %v18_v11, 0.0  ;;  %v20_v18 = vld [vmem:[%s310_s0 + $0x30] sm:$0xff]  ;;  %v26_v20 = vsel %vm22_vm0, %v16_v15, 0.0  ;;  %v17_v22 = vld [vmem:[%s310_s0 + $0x18] sm:$0xff] }
   0x6   :  { %129 = vperm.xlu1 %186, %v111_v3   ;;  %119 = vperm.xlu0 %185, %v109_v4   ;;  %v37_v17 = vsel %vm22_vm0, %v19_v12, 0.0  ;;  %v25_v19 = vadd.f32 %v24_v14, %v23_v13  ;;  %v39_v23 = vsel %vm22_vm0, %v20_v18, 0.0  ;;  %v21_v24 = vld [vmem:[%s310_s0 + $0x38] sm:$0xff]  ;;  %v28_v26 = vsel %vm22_vm0, %v17_v22, 0.0 }
   0x7   :  { %v38_v21 = vadd.f32 %v37_v17, %v36_v16  ;;  %v41_v28 = vsel %vm22_vm0, %v21_v24, 0.0 }
   0x8   :  { %v27_v25 = vadd.f32 %v26_v20, %v25_v19 }
   0x9   :  { %v40_v27 = vadd.f32 %v39_v23, %v38_v21 }
   0xa   :  { %151 = vperm.xlu1 %186, %v141_v5   ;;  %146 = vperm.xlu0 %185, %v140_v6   ;;  %v29_v29 = vadd.f32 %v28_v26, %v27_v25 }
   0xb   :  { %v42_v30 = vadd.f32 %v41_v28, %v40_v27 }
   0xc   :  { %v30_v31 = vrot.slane %v29_v29, 4 }
   0xd   :  { %v43_v32 = vrot.slane %v42_v30, 4 }
   0xe   :  { %161 = vperm.xlu1 %186, %v143_v7   ;;  %156 = vperm.xlu0 %185, %v142_v8   ;;  %v31_v33 = vadd.f32 %v30_v31, %v29_v29 }
   0xf   :  { %v44_v34 = vadd.f32 %v43_v32, %v42_v30 }
  0x10   :  { %v32_v35 = vrot.slane %v31_v33, 2 }
  0x11   :  { %v45_v36 = vrot.slane %v44_v34, 2 }
  0x12   :  { %v33_v37 = vadd.f32 %v32_v35, %v31_v33 }
  0x13   :  { %v46_v38 = vadd.f32 %v45_v36, %v44_v34 }
  0x14   :  { %v34_v39 = vrot.slane %v33_v37, 1 }
  0x15   :  { %v47_v40 = vrot.slane %v46_v38, 1 }
  0x16   :  { %v35_v41 = vadd.f32 %v34_v39, %v33_v37 }
  0x17   :  { %v48_v42 = vadd.f32 %v47_v40, %v46_v38 }
  0x18   :  { %v50_v43 = vmul.f32 0.03125, %v35_v41 }
  0x19   :  { %v51_v44 = vmul.f32 0.03125, %v48_v42 }
  0x1a   :  { %v52_v45 = vsub.f32 %v14_v9, %v50_v43  ;;  %v53_v46 = vsub.f32 %v15_v10, %v50_v43  ;;  %v54_v49 = vsub.f32 %v16_v15, %v50_v43  ;;  %v55_v55 = vsub.f32 %v17_v22, %v50_v43 }
  0x1b   :  { %v56_v47 = vsub.f32 %v18_v11, %v51_v44  ;;  %v57_v48 = vsub.f32 %v19_v12, %v51_v44  ;;  %v58_v52 = vsub.f32 %v20_v18, %v51_v44  ;;  %v59_v59 = vsub.f32 %v21_v24, %v51_v44 }
  0x1c   :  { %v60_v50 = vmul.f32 %v52_v45, %v52_v45  ;;  %v61_v51 = vmul.f32 %v53_v46, %v53_v46  ;;  %v62_v56 = vmul.f32 %v54_v49, %v54_v49  ;;  %v63_v0 = vmul.f32 %v55_v55, %v55_v55 }
  0x1d   :  { %v64_v53 = vmul.f32 %v56_v47, %v56_v47  ;;  %v65_v54 = vmul.f32 %v57_v48, %v57_v48  ;;  %v66_v60 = vmul.f32 %v58_v52, %v58_v52  ;;  %v67_v3 = vmul.f32 %v59_v59, %v59_v59 }
  0x1e   :  { %v68_v57 = vsel %vm22_vm0, %v60_v50, 0.0  ;;  %v69_v58 = vsel %vm22_vm0, %v61_v51, 0.0  ;;  %v71_v1 = vsel %vm22_vm0, %v62_v56, 0.0  ;;  %v73_v6 = vsel %vm22_vm0, %v63_v0, 0.0 }
  0x1f   :  { %v81_v61 = vsel %vm22_vm0, %v64_v53, 0.0  ;;  %v82_v62 = vsel %vm22_vm0, %v65_v54, 0.0  ;;  %v70_v63 = vadd.f32 %v69_v58, %v68_v57  ;;  %v84_v4 = vsel %vm22_vm0, %v66_v60, 0.0 }
  0x20   :  { %v83_v2 = vadd.f32 %v82_v62, %v81_v61  ;;  %v86_v8 = vsel %vm22_vm0, %v67_v3, 0.0 }
  0x21   :  { %v72_v5 = vadd.f32 %v71_v1, %v70_v63 }
  0x22   :  { %v85_v7 = vadd.f32 %v84_v4, %v83_v2 }
  0x23   :  { %v74_v9 = vadd.f32 %v73_v6, %v72_v5 }
  0x24   :  { %v87_v10 = vadd.f32 %v86_v8, %v85_v7 }
  0x25   :  { %v75_v11 = vrot.slane %v74_v9, 4 }
  0x26   :  { %v88_v12 = vrot.slane %v87_v10, 4 }
  0x27   :  { %v76_v13 = vadd.f32 %v75_v11, %v74_v9 }
  0x28   :  { %v89_v14 = vadd.f32 %v88_v12, %v87_v10 }
  0x29   :  { %v77_v15 = vrot.slane %v76_v13, 2 }
  0x2a   :  { %v90_v16 = vrot.slane %v89_v14, 2 }
  0x2b   :  { %v78_v17 = vadd.f32 %v77_v15, %v76_v13 }
  0x2c   :  { %v91_v18 = vadd.f32 %v90_v16, %v89_v14 }
  0x2d   :  { %v79_v19 = vrot.slane %v78_v17, 1 }
  0x2e   :  { %v92_v20 = vrot.slane %v91_v18, 1 }
  0x2f   :  { %v80_v21 = vadd.f32 %v79_v19, %v78_v17 }
  0x30   :  { %v93_v22 = vadd.f32 %v92_v20, %v91_v18 }
  0x31   :  { %v94_v23 = vmul.f32 0.03125, %v80_v21 }
  0x32   :  { %v95_v24 = vmul.f32 0.03125, %v93_v22 }
  0x33   :  { %v96_v25 = vadd.f32 1e-06, %v94_v23 }
  0x34   :  { %v97_v26 = vadd.f32 1e-06, %v95_v24 }
  0x35   :  { %187 = vrsqrt.f32 %v96_v25 }
  0x36   :  { %189 = vrsqrt.f32 %v97_v26 }
  0x3f   :  { %v188_v27 = vpop.eup %187 }
  0x40   :  { %v190_v28 = vpop.eup %189  ;;  %v100_v31 = vmul.f32 %v188_v27, %v52_v45  ;;  %v101_v33 = vmul.f32 %v188_v27, %v53_v46  ;;  %v102_v37 = vmul.f32 %v188_v27, %v54_v49  ;;  %v103_v39 = vmul.f32 %v188_v27, %v55_v55 }
  0x41   :  { %v104_v32 = vmul.f32 %v190_v28, %v56_v47  ;;  %v105_v34 = vmul.f32 %v190_v28, %v57_v48  ;;  %v106_v38 = vmul.f32 %v190_v28, %v58_v52  ;;  %v107_v40 = vmul.f32 %v190_v28, %v59_v59 }
  0x81   :  { %v125_v29 = vpop.permute.xlu1 %124  ;;  %v115_v30 = vpop.permute.xlu0 %114 }
  0x82   :  { %v132_v41 = vmul.f32 %v115_v30, %v100_v31  ;;  %v136_v42 = vmul.f32 %v115_v30, %v104_v32  ;;  %v134_v45 = vmul.f32 %v125_v29, %v102_v37  ;;  %v138_v47 = vmul.f32 %v125_v29, %v106_v38 }
  0x85   :  { %v130_v35 = vpop.permute.xlu1 %129  ;;  %v120_v36 = vpop.permute.xlu0 %119 }
  0x86   :  { %v133_v43 = vmul.f32 %v120_v36, %v101_v33  ;;  %v137_v44 = vmul.f32 %v120_v36, %v105_v34  ;;  %v135_v46 = vmul.f32 %v130_v35, %v103_v39  ;;  %v139_v48 = vmul.f32 %v130_v35, %v107_v40 }
  0x89   :  { %v152_v50 = vpop.permute.xlu1 %151  ;;  %v147_v51 = vpop.permute.xlu0 %146 }
  0x8a   :  { %v165_v53 = vadd.f32 %v152_v50, %v133_v43  ;;  %v169_v54 = vadd.f32 %v152_v50, %v137_v44  ;;  %v164_v56 = vadd.f32 %v147_v51, %v132_v41  ;;  %v168_v57 = vadd.f32 %v147_v51, %v136_v42 }
  0x8c   :  { %173 = vst.msk [vmem:[%s311_s3 + $0x8] sm:$0xff] %vm22_vm0, %v165_v53  ;;  %177 = vst.msk [vmem:[%s311_s3 + $0x28] sm:$0xff] %vm22_vm0, %v169_v54 }
  0x8d   :  { %172 = vst.msk [vmem:[%s311_s3] sm:$0xff] %vm22_vm0, %v164_v56  ;;  %176 = vst.msk [vmem:[%s311_s3 + $0x20] sm:$0xff] %vm22_vm0, %v168_v57  ;;  %v162_v49 = vpop.permute.xlu1 %161  ;;  %v157_v52 = vpop.permute.xlu0 %156 }
  0x8e   :  { %v167_v55 = vadd.f32 %v162_v49, %v135_v46  ;;  %v171_v58 = vadd.f32 %v162_v49, %v139_v48  ;;  %v166_v59 = vadd.f32 %v157_v52, %v134_v45  ;;  %v170_v60 = vadd.f32 %v157_v52, %v138_v47 }
  0x90   :  { %175 = vst.msk [vmem:[%s311_s3 + $0x18] sm:$0xff] %vm22_vm0, %v167_v55  ;;  %179 = vst.msk [vmem:[%s311_s3 + $0x38] sm:$0xff] %vm22_vm0, %v171_v58 }
  0x91   :  { %174 = vst.msk [vmem:[%s311_s3 + $0x10] sm:$0xff] %vm22_vm0, %v166_v59  ;;  %178 = vst.msk [vmem:[%s311_s3 + $0x30] sm:$0xff] %vm22_vm0, %v170_v60 }

</bundles_post_ra>
